<compile_context>
chip_gen: v6e
topology: v6e:2x2x1
jax: 0.10.0
libtpu: 0.0.40
codegen_flags: <defaults>
</compile_context>

<pallas_src>
import functools

import jax
import jax.numpy as jnp
from jax import lax
from jax.experimental import pallas as pl
from jax.experimental.pallas import tpu as pltpu

EPS_GEM = 1e-6
EPS_L2 = 1e-12          # F.normalize default eps
KH = KW = 3
COUT_PAD = 128          # lane-dense channel padding (keep 128 even for COUT=32)
_VMEM_BUDGET = 8 << 20  # double-buffered patch-block budget (safe on v5e/v6e/v7x)


# ---------------------------------------------------------------------------
# Shared kernel math
# ---------------------------------------------------------------------------
def _gem_power_sum(p, patch, w, b):
    """conv as ONE K=9*Cin MXU matmul + bias + ReLU + GeM clamp/pow, summed over rows."""
    acc = jnp.dot(patch, w, preferred_element_type=jnp.float32)   # bf16 x bf16 -> f32
    feat = jnp.maximum(acc + b, 0.0)                              # bias + ReLU (backbone)
    xc = jnp.maximum(feat, EPS_GEM)                               # clamp(min=eps)
    xpow = lax.cond(p == 3.0,
                    lambda v: v * v * v,                          # VPU fast path (p init=3)
                    lambda v: jnp.exp(p * jnp.log(v)),            # general p (EUP)
                    xc)
    return jnp.sum(xpow, axis=0, keepdims=True)                   # (1, COUT_PAD)


def _gem_finalize(p, s, hw, cout):
    """mean over H*W, ^(1/p), drop channel padding, L2 normalize."""
    m = s * (1.0 / hw)
    g = jnp.exp(jnp.log(m) / p)                                   # m ** (1/p)
    lane = lax.broadcasted_iota(jnp.int32, (1, COUT_PAD), 1)
    g = jnp.where(lane < cout, g, 0.0)                            # mask padded channels
    sumsq = jnp.sum(g * g, axis=-1, keepdims=True)
    inv = lax.rsqrt(jnp.maximum(sumsq, EPS_L2 * EPS_L2))          # == x / max(||x||, eps)
    return g * inv


# ---------------------------------------------------------------------------
# Kernels: single-shot (grid=(N,)) and spatially tiled fallback (grid=(N, T))
# ---------------------------------------------------------------------------
def _kernel_single(p_ref, patch_ref, w_ref, b_ref, o_ref, *, hw, cout):
    # Whole image per grid step: no accumulator scratch, no pl.when init/finalize.
    p = p_ref[0]
    s = _gem_power_sum(p, patch_ref[0], w_ref[...], b_ref[...])
    o_ref[...] = _gem_finalize(p, s, hw, cout).reshape(1, 1, COUT_PAD)


def _kernel_tiled(p_ref, patch_ref, w_ref, b_ref, o_ref, sum_ref, *, hw, cout):
    # Large-image fallback: spatial axis carries the GeM power-sum reduction.
    ti = pl.program_id(1)

    @pl.when(ti == 0)
    def _init():
        sum_ref[...] = jnp.zeros_like(sum_ref)

    p = p_ref[0]
    sum_ref[...] += _gem_power_sum(p, patch_ref[0], w_ref[...], b_ref[...])

    @pl.when(ti == pl.num_programs(1) - 1)
    def _finalize():
        o_ref[...] = _gem_finalize(p, sum_ref[...], hw, cout).reshape(1, 1, COUT_PAD)


def _basenet_pallas(p, patches, w, b, *, n, hw, cout, tile_hw):
    k = patches.shape[-1]
    p_spec = pl.BlockSpec(memory_space=pltpu.MemorySpace.SMEM)    # flat 1-D scalar ref

    if tile_hw == hw:                                             # single-shot path
        kernel = functools.partial(_kernel_single, hw=hw, cout=cout)
        grid = (n,)
        in_specs = [
            p_spec,
            pl.BlockSpec((1, hw, k), lambda bi: (bi, 0, 0)),              # patches
            pl.BlockSpec((k, COUT_PAD), lambda bi: (0, 0)),               # weights (resident)
            pl.BlockSpec((1, COUT_PAD), lambda bi: (0, 0)),               # bias (resident)
        ]
        out_specs = pl.BlockSpec((1, 1, COUT_PAD), lambda bi: (bi, 0, 0))
        scratch = []
        dims = ("parallel",)
    else:                                                         # tiled fallback
        kernel = functools.partial(_kernel_tiled, hw=hw, cout=cout)
        grid = (n, hw // tile_hw)
        in_specs = [
            p_spec,
            pl.BlockSpec((1, tile_hw, k), lambda bi, ti: (bi, ti, 0)),
            pl.BlockSpec((k, COUT_PAD), lambda bi, ti: (0, 0)),
            pl.BlockSpec((1, COUT_PAD), lambda bi, ti: (0, 0)),
        ]
        out_specs = pl.BlockSpec((1, 1, COUT_PAD), lambda bi, ti: (bi, 0, 0))
        scratch = [pltpu.VMEM((1, COUT_PAD), jnp.float32)]
        dims = ("parallel", "arbitrary")

    return pl.pallas_call(
        kernel,
        out_shape=jax.ShapeDtypeStruct((n, 1, COUT_PAD), jnp.float32),
        grid_spec=pltpu.PrefetchScalarGridSpec(
            num_scalar_prefetch=0,
            grid=grid,
            in_specs=in_specs,
            out_specs=out_specs,
            scratch_shapes=scratch,
        ),
        compiler_params=pltpu.CompilerParams(
            dimension_semantics=dims,
            vmem_limit_bytes=32 * 1024 * 1024),
    )(p, patches, w, b)


def _pick_spatial_tile(hw, row_bytes):
    """Largest spatial tile (multiple of 8 dividing hw) whose double-buffered patch
    block stays under the VMEM budget; the whole image if it fits."""
    if 2 * hw * row_bytes <= _VMEM_BUDGET:
        return hw
    tile = max(8, (_VMEM_BUDGET // (2 * row_bytes)) // 8 * 8)
    while tile > 8 and hw % tile:
        tile -= 8
    return tile if hw % tile == 0 else hw


# ---------------------------------------------------------------------------
# Wrapper: BaseNet.forward
# ---------------------------------------------------------------------------
@functools.partial(jax.jit, static_argnames=("spatial_tile",))
def basenet_forward(x_nchw, conv_w, conv_b, gem_p, spatial_tile=None):
    """x_nchw: (N, Cin, H, W) f32; conv_w: (9*Cin, Cout) flat in (kh, kw, cin) order.
    Returns (N, Cout) L2-normalized GeM descriptors (== BaseNet.forward)."""
    n, cin, h, w = x_nchw.shape
    cout = conv_b.shape[0]
    hw = h * w
    k = KH * KW * cin

    # Layout glue: NCHW -> NHWC, zero-pad for 3x3/pad=1, im2col to (N, H*W, 9*Cin).
    # With small Cin this is tiny (~36 KB/batch) and gives a relayout-free single-matmul LHS.
    # TODO(synk): for large Cin / large images, skip im2col and DMA halo'd rows instead.
    x = jnp.transpose(x_nchw, (0, 2, 3, 1))
    xp = jnp.pad(x, ((0, 0), (1, 1), (1, 1), (0, 0)))
    cols = [xp[:, i:i + h, j:j + w, :] for i in range(KH) for j in range(KW)]
    patches = jnp.concatenate(cols, axis=-1).reshape(n, hw, k).astype(jnp.bfloat16)

    w_k = jnp.pad(conv_w, ((0, 0), (0, COUT_PAD - cout))).astype(jnp.bfloat16)
    b_k = jnp.pad(conv_b.reshape(1, cout), ((0, 0), (0, COUT_PAD - cout))).astype(jnp.float32)
    p_k = gem_p.reshape(1).astype(jnp.float32)

    tile_hw = spatial_tile if spatial_tile is not None else _pick_spatial_tile(hw, k * 2)
    out = _basenet_pallas(p_k, patches, w_k, b_k,
                          n=n, hw=hw, cout=cout, tile_hw=tile_hw)
    return out[:, 0, :cout]


# ---------------------------------------------------------------------------
# Pure-JAX reference (same math, no Pallas) for correctness checks.
# ---------------------------------------------------------------------------
def _reference(x_nchw, conv_w, conv_b, gem_p, matmul_dtype=jnp.float32):
    n, cin, h, w = x_nchw.shape
    cout = conv_b.shape[0]
    x = jnp.transpose(x_nchw, (0, 2, 3, 1))
    xp = jnp.pad(x, ((0, 0), (1, 1), (1, 1), (0, 0)))
    cols = [xp[:, i:i + h, j:j + w, :] for i in range(KH) for j in range(KW)]
    patches = jnp.concatenate(cols, axis=-1).reshape(n * h * w, KH * KW * cin)
    conv = jnp.dot(patches.astype(matmul_dtype), conv_w.astype(matmul_dtype),
                   preferred_element_type=jnp.float32)
    feat = jnp.maximum(conv + conv_b, 0.0).reshape(n, h * w, cout)
    p = gem_p[0]
    g = jnp.mean(jnp.clip(feat, EPS_GEM, None) ** p, axis=1) ** (1.0 / p)
    nrm = jnp.sqrt(jnp.sum(g * g, axis=-1, keepdims=True))
    return g / jnp.maximum(nrm, EPS_L2)


if __name__ == "__main__":
    # Small shapes: batch=2, channels=4, spatial=16, backbone feature dim=32.
    N, CIN, H, W = 2, 4, 16, 16
    COUT = 32

    key = jax.random.PRNGKey(0)
    kx, kw_, kb = jax.random.split(key, 3)

    x = jax.random.normal(kx, (N, CIN, H, W), dtype=jnp.float32)
    # Deterministic synthetic backbone params: conv weight flat as (kh*kw*Cin, Cout).
    conv_w = 0.1 * jax.random.normal(kw_, (KH * KW * CIN, COUT), dtype=jnp.float32)
    conv_b = 0.1 * jax.random.normal(kb, (COUT,), dtype=jnp.float32)
    gem_p = jnp.array([3.0], dtype=jnp.float32)     # GeM learnable p, init = 3

    out = basenet_forward(x, conv_w, conv_b, gem_p)
    jax.block_until_ready(out)
    assert out.shape == (N, COUT), out.shape

    # L2 norm of each descriptor should be ~1.0.
    norms = jnp.sqrt(jnp.sum(out * out, axis=-1))
    assert bool(jnp.all(jnp.abs(norms - 1.0) < 1e-4)), norms

    # Tight check vs a reference using the same bf16-operand / f32-accumulate matmul.
    ref_bf16 = _reference(x, conv_w, conv_b, gem_p, matmul_dtype=jnp.bfloat16)
    err = float(jnp.max(jnp.abs(out - ref_bf16)))
    assert err < 2e-4, err

    # Looser check vs the full-f32 (torch-semantics) reference.
    ref_f32 = _reference(x, conv_w, conv_b, gem_p, matmul_dtype=jnp.float32)
    err32 = float(jnp.max(jnp.abs(out - ref_f32)))
    assert err32 < 5e-3, err32

    # Exercise the tiled (large-image) fallback path and check it matches.
    out_tiled = basenet_forward(x, conv_w, conv_b, gem_p, spatial_tile=64)
    jax.block_until_ready(out_tiled)
    err_t = float(jnp.max(jnp.abs(out - out_tiled)))
    assert err_t < 1e-4, err_t

    print("KERNEL_OK")
</pallas_src>

<mosaic_0001>
module attributes {stable_mosaic.version = 11 : i64} {
  func.func @_kernel_single(%arg0: i32, %arg1: memref<1xf32, #tpu.memory_space<smem>>, %arg2: memref<1x256x36xbf16, #tpu.memory_space<vmem>>, %arg3: memref<36x128xbf16, #tpu.memory_space<vmem>>, %arg4: memref<1x128xf32, #tpu.memory_space<vmem>>, %arg5: memref<1x1x128xf32, #tpu.memory_space<vmem>>) attributes {dimension_semantics = [#tpu.dimension_semantics<parallel>], iteration_bounds = array<i64: 2>, scalar_prefetch = 0 : i64, scratch_operands = 0 : i64, tpu.core_type = #tpu.core_type<tc>, window_params = [{transform_indices = @transform_0, window_bounds = array<i64: 1>}, {transform_indices = @transform_1, window_bounds = array<i64: 1, 256, 36>}, {pipeline_mode = #tpu.pipeline_mode<synchronous>, transform_indices = @transform_2, window_bounds = array<i64: 36, 128>}, {pipeline_mode = #tpu.pipeline_mode<synchronous>, transform_indices = @transform_3, window_bounds = array<i64: 1, 128>}, {transform_indices = @transform_4, window_bounds = array<i64: 1, 1, 128>}]} {
    %c0 = arith.constant 0 : index
    %0 = memref.load %arg1[%c0] : memref<1xf32, #tpu.memory_space<smem>>
    %c0_0 = arith.constant 0 : index
    %c0_1 = arith.constant 0 : index
    %c0_2 = arith.constant 0 : index
    %1 = vector.load %arg2[%c0_0, %c0_1, %c0_2] : memref<1x256x36xbf16, #tpu.memory_space<vmem>>, vector<1x256x36xbf16>
    %2 = vector.shape_cast %1 : vector<1x256x36xbf16> to vector<256x36xbf16>
    %c0_3 = arith.constant 0 : index
    %c0_4 = arith.constant 0 : index
    %3 = vector.load %arg3[%c0_3, %c0_4] : memref<36x128xbf16, #tpu.memory_space<vmem>>, vector<36x128xbf16>
    %c0_5 = arith.constant 0 : index
    %c0_6 = arith.constant 0 : index
    %4 = vector.load %arg4[%c0_5, %c0_6] : memref<1x128xf32, #tpu.memory_space<vmem>>, vector<1x128xf32>
    %cst = arith.constant dense<0.000000e+00> : vector<256x128xf32>
    %5 = tpu.matmul %2, %3, %cst {dimension_numbers = #tpu.dot_dimension_numbers<[1], [0], [0], [1], [0, 0, 1, 1], [], []>} : vector<256x36xbf16>, vector<36x128xbf16>, vector<256x128xf32> -> vector<256x128xf32>
    %6 = vector.broadcast %4 : vector<1x128xf32> to vector<256x128xf32>
    %7 = arith.addf %5, %6 : vector<256x128xf32>
    %cst_7 = arith.constant 0.000000e+00 : f32
    %8 = vector.broadcast %cst_7 : f32 to vector<256x128xf32>
    %9 = arith.maximumf %7, %8 : vector<256x128xf32>
    %cst_8 = arith.constant 9.99999997E-7 : f32
    %10 = vector.broadcast %cst_8 : f32 to vector<256x128xf32>
    %11 = arith.maximumf %9, %10 : vector<256x128xf32>
    %cst_9 = arith.constant 3.000000e+00 : f32
    %12 = arith.cmpf oeq, %0, %cst_9 : f32
    %13 = arith.extui %12 : i1 to i32
    %c0_i32 = arith.constant 0 : i32
    %14 = arith.cmpi ne, %13, %c0_i32 : i32
    %15 = scf.if %14 -> (vector<256x128xf32>) {
      %39 = arith.mulf %11, %11 : vector<256x128xf32>
      %40 = arith.mulf %39, %11 : vector<256x128xf32>
      scf.yield %40 : vector<256x128xf32>
    } else {
      %39 = math.log %11 : vector<256x128xf32>
      %40 = vector.broadcast %0 : f32 to vector<256x128xf32>
      %41 = arith.mulf %40, %39 : vector<256x128xf32>
      %42 = math.exp %41 : vector<256x128xf32>
      scf.yield %42 : vector<256x128xf32>
    }
    %cst_10 = arith.constant dense<0.000000e+00> : vector<128xf32>
    %16 = vector.multi_reduction <add>, %15, %cst_10 [0] : vector<256x128xf32> to vector<128xf32>
    %17 = vector.shape_cast %16 : vector<128xf32> to vector<1x128xf32>
    %cst_11 = arith.constant 3.906250e-03 : f32
    %18 = vector.broadcast %cst_11 : f32 to vector<1x128xf32>
    %19 = arith.mulf %17, %18 : vector<1x128xf32>
    %20 = math.log %19 : vector<1x128xf32>
    %21 = vector.broadcast %0 : f32 to vector<1x128xf32>
    %22 = arith.divf %20, %21 : vector<1x128xf32>
    %23 = math.exp %22 : vector<1x128xf32>
    %24 = tpu.iota {dimensions = array<i32: 1>} : vector<1x128xi32>
    %c32_i32 = arith.constant 32 : i32
    %25 = vector.broadcast %c32_i32 : i32 to vector<1x128xi32>
    %26 = arith.cmpi slt, %24, %25 : vector<1x128xi32>
    %cst_12 = arith.constant 0.000000e+00 : f32
    %27 = vector.broadcast %cst_12 : f32 to vector<1x128xf32>
    %28 = arith.select %26, %23, %27 : vector<1x128xi1>, vector<1x128xf32>
    %29 = arith.mulf %28, %28 : vector<1x128xf32>
    %cst_13 = arith.constant dense<0.000000e+00> : vector<1xf32>
    %30 = vector.multi_reduction <add>, %29, %cst_13 [1] : vector<1x128xf32> to vector<1xf32>
    %31 = vector.shape_cast %30 : vector<1xf32> to vector<1x1xf32>
    %cst_14 = arith.constant 1.000000e-24 : f32
    %32 = vector.broadcast %cst_14 : f32 to vector<1x1xf32>
    %33 = arith.maximumf %31, %32 : vector<1x1xf32>
    %34 = math.rsqrt %33 : vector<1x1xf32>
    %35 = vector.broadcast %34 : vector<1x1xf32> to vector<1x128xf32>
    %36 = arith.mulf %28, %35 : vector<1x128xf32>
    %37 = vector.shape_cast %36 : vector<1x128xf32> to vector<1x1x128xf32>
    %c0_15 = arith.constant 0 : index
    %c0_16 = arith.constant 0 : index
    %c0_17 = arith.constant 0 : index
    %38 = vector.load %arg5[%c0_15, %c0_16, %c0_17] : memref<1x1x128xf32, #tpu.memory_space<vmem>>, vector<1x1x128xf32>
    tpu.vector_store %arg5[%c0_15, %c0_16, %c0_17], %37 {strides = array<i32>} : memref<1x1x128xf32, #tpu.memory_space<vmem>>, vector<1x1x128xf32>,
    return
  }
  func.func @transform_0(%arg0: i32) -> i32 {
    %c0_i32 = arith.constant 0 : i32
    %c0_i32_0 = arith.constant 0 : i32
    return %c0_i32 : i32
  }
  func.func @transform_1(%arg0: i32) -> (i32, i32, i32) {
    %c0_i32 = arith.constant 0 : i32
    %c0_i32_0 = arith.constant 0 : i32
    %c0_i32_1 = arith.constant 0 : i32
    return %arg0, %c0_i32, %c0_i32_0 : i32, i32, i32
  }
  func.func @transform_2(%arg0: i32) -> (i32, i32) {
    %c0_i32 = arith.constant 0 : i32
    %c0_i32_0 = arith.constant 0 : i32
    %c0_i32_1 = arith.constant 0 : i32
    return %c0_i32, %c0_i32_0 : i32, i32
  }
  func.func @transform_3(%arg0: i32) -> (i32, i32) {
    %c0_i32 = arith.constant 0 : i32
    %c0_i32_0 = arith.constant 0 : i32
    %c0_i32_1 = arith.constant 0 : i32
    return %c0_i32, %c0_i32_0 : i32, i32
  }
  func.func @transform_4(%arg0: i32) -> (i32, i32, i32) {
    %c0_i32 = arith.constant 0 : i32
    %c0_i32_0 = arith.constant 0 : i32
    %c0_i32_1 = arith.constant 0 : i32
    return %arg0, %c0_i32, %c0_i32_0 : i32, i32, i32
  }
}

</mosaic_0001>

<bundles_post_ra>
// kernel: basenet_forward.1
= control target key start
LH: loop header
LB: loop body
LE: loop exit
PB: predicated region body
PF: predicated region fallthrough
CT: control target
= control target key end

     0   :  { %s2880_s0 = inlined_call_operand.<no memory space> [shape: f32[1], index: 0, kind: input, shape index: {}]   ;;  %s2881_s1 = inlined_call_operand.vmem [shape: bf16[2,256,36], index: 1, kind: input, shape index: {}]   ;;  %s2882_s2 = inlined_call_operand.vmem [shape: bf16[36,128], index: 2, kind: input, shape index: {}]   ;;  %s2883_s3 = inlined_call_operand.vmem [shape: f32[1,128], index: 3, kind: input, shape index: {}]   ;;  %s2884_s4 = inlined_call_operand.hbm [shape: f32[2,1,128], index: 4, kind: output, shape index: {}]  }
   0x1   :  { %9 = sst [smem:[#allocation2]] %s2880_s0 }
   0x2   :  { %10 = vsyncpa [#allocation4], 0 }
   0x3   :  { %12 = vsyncpa [#allocation4 + $0x1], 0  ;;  %s2071_s17 = smov 0   ;;  %s2073_s18 = smov 0  }
   0x4   :  { %s2075_s19 = smov 0   ;;  %s2077_s20 = smov 0  }
   0x5 LB: > { %s2092_s0 = sadd.s32 4294967295, %s1912_s20   ;;  %s1035_s21 = sadd.s32 4294967294, %s1912_s20   ;;  %s1912_s20 = sphi %s2077_s20, %s2942_s20   ;;  %s1908_s19 = sphi %s2075_s19, %s2941_s19   ;;  %s1904_s18 = sphi %s2073_s18, %s2940_s18   ;;  %s1900_s17 = sphi %s2071_s17, %s2939_s17  }
   0x6   : > { %s2096_s22 = sadd.s32 1, %s1912_s20   ;;  %s114_s23 = sadd.s32 1, %s1908_s19 }
   0x7   : > { %s111_s24 = ssub.s32 %s1912_s20, %s2096_s22  ;;  %p124_p0 = scmp.ne.s32.totalorder %s1908_s19, %s1904_s18 }
   0x8   : > { %p112_p1 = scmp.eq.s32.totalorder %s111_s24, 0  ;;  %p125_p2 = scmp.eq.s32.totalorder %s2092_s0, 1 }
   0x9   : > { %p130_p3 = scmp.ne.s32.totalorder %s1904_s18, %s1900_s17  ;;  %p131_p4 = scmp.eq.s32.totalorder %s1035_s21, 1 }
   0xa   : > { %s2107_s25 = scalar_select %p112_p1, %s1908_s19, %s114_s23  }
   0xb   : > { %p2109_p5 = por %p125_p2, %p124_p0  ;;  %p2113_p6 = por %p131_p4, %p130_p3 }
   0xc   : > { %p1038_p7 = scmp.ge.s32.totalorder %s1912_s20, 1  ;;  %p166_p8 = scmp.lt.s32.totalorder %s1912_s20, 3 }
   0xe   : > { %p167_p9 = pnand %p1038_p7, %p166_p8 }
  0x10   : > { %170 = sbr.rel (%p167_p9) target bundleno = 638 (0x27e), region = 36 }
  0x15   : > { %s189_s28 = sand.u32 1, %s1904_s18   ;;  %v1569_v0 = vld [vmem:[%s2882_s2 + $0x10] ss:$0 sps:$4 sm:$0x33]   ;;  %vm386_vm0 = vcmask 1041408   ;;  %v1570_v2 = vld [vmem:[%s2882_s2 + $0x8] sm:$0xff]  }
  0x16   : > { %1144 = vmatprep.subr.msk.bf16.mxu0 %vm386_vm0, %v1569_v0  ;;  %1145 = vmatprep.subr.msk.bf16.mxu1 %vm386_vm0, %v1569_v0  ;;  %v388_v1 = vsel %vm386_vm0, %v1569_v0, 0  ;;  %p191_p10 = scmp.lt.s32.totalorder %s2092_s0, 1  ;;  %v1571_v3 = vld [vmem:[%s2882_s2] sm:$0xff]   ;;  %vm337_vm1 = vcmask 293888   ;;  %s2168_s14 = sld [smem:[#allocation2]] }
  0x17   : > { %1101 = vmatpush3.bf16.msra.mxu0 %v388_v1  ;;  %1141 = vmatpush3.bf16.msra.mxu1 %v388_v1  ;;  %v2174_v20 = vld [vmem:[%s2883_s3] ss:$0 sm:$0xff]  ;;  %s2501_s23 = scalar_lea.vmem [#allocation3], %s189_s28 }
  0x18   : > { %1102 = vmatprep.subr.bf16.mxu0 %v1570_v2  ;;  %1139 = vmatprep.subr.bf16.mxu1 %v1570_v2  ;;  %s192_s9 = scalar_select %p191_p10, %s2092_s0, 1 }
  0x1a   : > { %s1080_s10 = sshll.u32 %s192_s9, 7 }
  0x1b   : > { %1103 = vmatpush3.bf16.msra.mxu0 %v1570_v2  ;;  %1142 = vmatpush3.bf16.msra.mxu1 %v1570_v2  ;;  %s2134_s13 = scalar_lea.vmem %s2881_s1, %s1080_s10 }
  0x1c   : > { %1104 = vmatprep.subr.bf16.mxu0 %v1571_v3  ;;  %1140 = vmatprep.subr.bf16.mxu1 %v1571_v3  ;;  %v1572_v4 = vld [vmem:[%s2134_s13] sm:$0xff]   ;;  %v1574_v6 = vld [vmem:[%s2134_s13 + $0x8] sm:$0xff]   ;;  %v1576_v8 = vld [vmem:[%s2134_s13 + $0x10] sm:$0xff]   ;;  %p615_p11 = scmp.eq.f32.partialorder %s2168_s14, 3.0 }
  0x1d   : > { %v1573_v5 = vld [vmem:[%s2134_s13 + $0x40] sm:$0xff]   ;;  %1106 = vmatprep.mubr.msk.bf16.mxu0 %vm337_vm1, %v1572_v4  ;;  %v1575_v7 = vld [vmem:[%s2134_s13 + $0x48] sm:$0xff]   ;;  %v1577_v9 = vld [vmem:[%s2134_s13 + $0x50] sm:$0xff]  }
  0x1e   : > { %1122 = vmatprep.mubr.msk.bf16.mxu1 %vm337_vm1, %v1573_v5  ;;  %v1578_v10 = vld [vmem:[%s2134_s13 + $0x18] sm:$0xff]   ;;  %v1580_v12 = vld [vmem:[%s2134_s13 + $0x20] sm:$0xff]   ;;  %v1582_v14 = vld [vmem:[%s2134_s13 + $0x28] sm:$0xff]   ;;  %s1146_s21 = scalar_select %p615_p11, 1, 0 }
  0x1f   : > { %1105 = vmatpush3.bf16.msra.mxu0 %v1571_v3  ;;  %1143 = vmatpush3.bf16.msra.mxu1 %v1571_v3  ;;  %v1579_v11 = vld [vmem:[%s2134_s13 + $0x58] sm:$0xff]   ;;  %v1581_v13 = vld [vmem:[%s2134_s13 + $0x60] sm:$0xff]   ;;  %v1583_v15 = vld [vmem:[%s2134_s13 + $0x68] sm:$0xff]  }
  0x20   : > { %v1584_v16 = vld [vmem:[%s2134_s13 + $0x30] sm:$0xff]   ;;  %v1586_v18 = vld [vmem:[%s2134_s13 + $0x38] sm:$0xff]   ;;  %v1147_v25 = vstv %s1146_s21 }
  0x21   : > { %v1585_v17 = vld [vmem:[%s2134_s13 + $0x70] sm:$0xff]   ;;  %v1587_v19 = vld [vmem:[%s2134_s13 + $0x78] sm:$0xff]   ;;  %vm2186_vm2 = vcmp.ne.s32.totalorder %v1147_v25, 0 }
  0x22   : > { %1107 = vmatmul.mubr.msk.bf16.vlgmr.msra.gmra.mxu0 %vm337_vm1, %v1574_v6  ;;  %1123 = vmatmul.mubr.msk.bf16.vlgmr.msra.gmra.mxu1 %vm337_vm1, %v1575_v7 }
  0x23   : > { %1110 = vmatprep.mubr.msk.bf16.mxu0 %vm337_vm1, %v1576_v8  ;;  %1126 = vmatprep.mubr.msk.bf16.mxu1 %vm337_vm1, %v1577_v9 }
  0x2a   : > { %1111 = vmatmul.mubr.msk.bf16.gmra.mxu0 %vm337_vm1, %v1578_v10  ;;  %1127 = vmatmul.mubr.msk.bf16.gmra.mxu1 %vm337_vm1, %v1579_v11 }
  0x2b   : > { %1114 = vmatprep.mubr.msk.bf16.mxu0 %vm337_vm1, %v1580_v12  ;;  %1130 = vmatprep.mubr.msk.bf16.mxu1 %vm337_vm1, %v1581_v13 }
  0x32   : > { %1115 = vmatmul.mubr.msk.bf16.gmra.mxu0 %vm337_vm1, %v1582_v14  ;;  %1131 = vmatmul.mubr.msk.bf16.gmra.mxu1 %vm337_vm1, %v1583_v15 }
  0x33   : > { %1118 = vmatprep.mubr.msk.bf16.mxu0 %vm337_vm1, %v1584_v16  ;;  %1134 = vmatprep.mubr.msk.bf16.mxu1 %vm337_vm1, %v1585_v17 }
  0x3a   : > { %1119 = vmatmul.mubr.msk.bf16.gmra.mxu0 %vm337_vm1, %v1586_v18  ;;  %1135 = vmatmul.mubr.msk.bf16.gmra.mxu1 %vm337_vm1, %v1587_v19 }
  0xe2   : > { %v1108_v21 = vpop.f32.mrf.mxu0  ;;  %v1124_v22 = vpop.f32.mrf.mxu1 }
  0xe3   : > { %v433_v23 = vadd.f32 %v1108_v21, %v2174_v20  ;;  %v497_v24 = vadd.f32 %v1124_v22, %v2174_v20 }
  0xe4   : > { %v424_v26 = vpop.f32.mrf.mxu0  ;;  %v488_v27 = vpop.f32.mrf.mxu1 }
  0xe5   : > { %v553_v28 = vmax.f32 %v433_v23, 0.0  ;;  %v569_v29 = vmax.f32 %v497_v24, 0.0  ;;  %v425_v30 = vadd.f32 %v2174_v20, %v424_v26  ;;  %v489_v31 = vadd.f32 %v2174_v20, %v488_v27 }
  0xe6   : > { %v1109_v32 = vpop.f32.mrf.mxu0  ;;  %v1125_v33 = vpop.f32.mrf.mxu1 }
  0xe7   : > { %v2182_v34 = vmax.f32 %v553_v28, 1e-06  ;;  %v2184_v35 = vmax.f32 %v569_v29, 1e-06  ;;  %v551_v36 = vmax.f32 %v425_v30, 0.0  ;;  %v567_v37 = vmax.f32 %v489_v31, 0.0 }
  0xe8   : > { %v436_v39 = vadd.f32 %v1109_v32, %v2174_v20  ;;  %v500_v40 = vadd.f32 %v1125_v33, %v2174_v20  ;;  %v427_v41 = vpop.f32.mrf.mxu0  ;;  %v491_v42 = vpop.f32.mrf.mxu1 }
  0xe9   : > { %v621_v43 = vmul.f32 %v2182_v34, %v2182_v34  ;;  %v637_v44 = vmul.f32 %v2184_v35, %v2184_v35  ;;  %v2196_v45 = vmax.f32 %v551_v36, 1e-06  ;;  %v2198_v46 = vmax.f32 %v567_v37, 1e-06 }
  0xea   : > { %v554_v47 = vmax.f32 %v436_v39, 0.0  ;;  %v570_v48 = vmax.f32 %v500_v40, 0.0  ;;  %v428_v49 = vadd.f32 %v2174_v20, %v427_v41  ;;  %v492_v50 = vadd.f32 %v2174_v20, %v491_v42  ;;  %v1112_v51 = vpop.f32.mrf.mxu0  ;;  %v1128_v52 = vpop.f32.mrf.mxu1 }
  0xeb   : > { %v2203_v53 = vmul.f32 %v621_v43, %v2182_v34  ;;  %v2206_v54 = vmul.f32 %v637_v44, %v2184_v35  ;;  %v619_v55 = vmul.f32 %v2196_v45, %v2196_v45  ;;  %v635_v56 = vmul.f32 %v2198_v46, %v2198_v46 }
  0xec   : > { %v2212_v57 = vmax.f32 %v554_v47, 1e-06  ;;  %v2214_v58 = vmax.f32 %v570_v48, 1e-06  ;;  %v552_v59 = vmax.f32 %v428_v49, 0.0  ;;  %v568_v60 = vmax.f32 %v492_v50, 0.0  ;;  %v440_v61 = vpop.f32.mrf.mxu0  ;;  %v504_v62 = vpop.f32.mrf.mxu1 }
  0xed   : > { %v2223_v1 = vmul.f32 %v619_v55, %v2196_v45  ;;  %v2226_v2 = vmul.f32 %v635_v56, %v2198_v46  ;;  %v449_v11 = vadd.f32 %v1112_v51, %v2174_v20  ;;  %v513_v12 = vadd.f32 %v1128_v52, %v2174_v20 }
  0xee   : > { %v622_v3 = vmul.f32 %v2212_v57, %v2212_v57  ;;  %v638_v4 = vmul.f32 %v2214_v58, %v2214_v58  ;;  %v2232_v5 = vmax.f32 %v552_v59, 1e-06  ;;  %v2234_v6 = vmax.f32 %v568_v60, 1e-06  ;;  %v1113_v7 = vpop.f32.mrf.mxu0  ;;  %v1129_v8 = vpop.f32.mrf.mxu1 }
  0xef   : > { %v557_v19 = vmax.f32 %v449_v11, 0.0  ;;  %v573_v21 = vmax.f32 %v513_v12, 0.0  ;;  %v441_v22 = vadd.f32 %v2174_v20, %v440_v61  ;;  %v505_v23 = vadd.f32 %v2174_v20, %v504_v62 }
  0xf0   : > { %v2245_v13 = vmul.f32 %v622_v3, %v2212_v57  ;;  %v2248_v14 = vmul.f32 %v638_v4, %v2214_v58  ;;  %v620_v15 = vmul.f32 %v2232_v5, %v2232_v5  ;;  %v636_v16 = vmul.f32 %v2234_v6, %v2234_v6  ;;  %v443_v17 = vpop.f32.mrf.mxu0  ;;  %v507_v18 = vpop.f32.mrf.mxu1 }
  0xf1   : > { %v2268_v30 = vmax.f32 %v557_v19, 1e-06  ;;  %v2270_v31 = vmax.f32 %v573_v21, 1e-06  ;;  %v555_v32 = vmax.f32 %v441_v22, 0.0  ;;  %v571_v33 = vmax.f32 %v505_v23, 0.0 }
  0xf2   : > { %v2263_v26 = vmul.f32 %v620_v15, %v2232_v5  ;;  %v2266_v27 = vmul.f32 %v636_v16, %v2234_v6  ;;  %v1116_v28 = vpop.f32.mrf.mxu0  ;;  %v1132_v29 = vpop.f32.mrf.mxu1  ;;  %v452_v39 = vadd.f32 %v1113_v7, %v2174_v20  ;;  %v516_v40 = vadd.f32 %v1129_v8, %v2174_v20 }
  0xf3   : > { %2897 = vst [vmem:[#allocation6_spill] sm:$0xff] %v2270_v31  ;;  %v625_v43 = vmul.f32 %v2268_v30, %v2268_v30  ;;  %v641_v44 = vmul.f32 %v2270_v31, %v2270_v31  ;;  %v2284_v47 = vmax.f32 %v555_v32, 1e-06  ;;  %v2286_v48 = vmax.f32 %v571_v33, 1e-06 }
  0xf4   : > { %v456_v41 = vpop.f32.mrf.mxu0  ;;  %v520_v42 = vpop.f32.mrf.mxu1  ;;  %v558_v49 = vmax.f32 %v452_v39, 0.0  ;;  %v574_v50 = vmax.f32 %v516_v40, 0.0  ;;  %v444_v51 = vadd.f32 %v2174_v20, %v443_v17  ;;  %v508_v52 = vadd.f32 %v2174_v20, %v507_v18 }
  0xf5   : > { %v2291_v55 = vmul.f32 %v625_v43, %v2268_v30  ;;  %v2294_v56 = vmul.f32 %v641_v44, %v2270_v31  ;;  %v623_v59 = vmul.f32 %v2284_v47, %v2284_v47  ;;  %v639_v60 = vmul.f32 %v2286_v48, %v2286_v48 }
  0xf6   : > { %v1117_v61 = vpop.f32.mrf.mxu0  ;;  %v1133_v62 = vpop.f32.mrf.mxu1  ;;  %v2300_v3 = vmax.f32 %v558_v49, 1e-06  ;;  %v2302_v4 = vmax.f32 %v574_v50, 1e-06  ;;  %v556_v7 = vmax.f32 %v444_v51, 0.0  ;;  %v572_v8 = vmax.f32 %v508_v52, 0.0 }
  0xf7   : > { %v2311_v15 = vmul.f32 %v623_v59, %v2284_v47  ;;  %v2314_v16 = vmul.f32 %v639_v60, %v2286_v48  ;;  %v465_v32 = vadd.f32 %v1116_v28, %v2174_v20  ;;  %v529_v33 = vadd.f32 %v1132_v29, %v2174_v20 }
  0xf8   : > { %2898 = vst [vmem:[#allocation7_spill] sm:$0xff] %v2302_v4  ;;  %v626_v17 = vmul.f32 %v2300_v3, %v2300_v3  ;;  %v642_v18 = vmul.f32 %v2302_v4, %v2302_v4  ;;  %v2320_v19 = vmax.f32 %v556_v7, 1e-06  ;;  %v2322_v21 = vmax.f32 %v572_v8, 1e-06  ;;  %v459_v39 = vpop.f32.mrf.mxu0  ;;  %v523_v40 = vpop.f32.mrf.mxu1 }
  0xf9   : > { %v561_v51 = vmax.f32 %v465_v32, 0.0  ;;  %v577_v52 = vmax.f32 %v529_v33, 0.0  ;;  %v457_v28 = vadd.f32 %v2174_v20, %v456_v41  ;;  %v521_v29 = vadd.f32 %v2174_v20, %v520_v42 }
  0xfa   : > { %v2333_v43 = vmul.f32 %v626_v17, %v2300_v3  ;;  %v2336_v44 = vmul.f32 %v642_v18, %v2302_v4  ;;  %v624_v49 = vmul.f32 %v2320_v19, %v2320_v19  ;;  %v640_v50 = vmul.f32 %v2322_v21, %v2322_v21  ;;  %v1120_v32 = vpop.f32.mrf.mxu0  ;;  %v1136_v33 = vpop.f32.mrf.mxu1 }
  0xfb   : > { %v2356_v17 = vmax.f32 %v561_v51, 1e-06  ;;  %v2358_v18 = vmax.f32 %v577_v52, 1e-06  ;;  %v559_v41 = vmax.f32 %v457_v28, 0.0  ;;  %v575_v42 = vmax.f32 %v521_v29, 0.0 }
  0xfc   : > { %v2351_v7 = vmul.f32 %v624_v49, %v2320_v19  ;;  %v2354_v8 = vmul.f32 %v640_v50, %v2322_v21  ;;  %v468_v36 = vadd.f32 %v1117_v61, %v2174_v20  ;;  %v532_v50 = vadd.f32 %v1133_v62, %v2174_v20  ;;  %v536_v59 = vpop.f32.mrf.mxu1 }
  0xfd   : > { %2899 = vst [vmem:[#allocation8_spill] sm:$0xff] %v2358_v18  ;;  %v629_v51 = vmul.f32 %v2356_v17, %v2356_v17  ;;  %v645_v52 = vmul.f32 %v2358_v18, %v2358_v18  ;;  %v2372_v28 = vmax.f32 %v559_v41, 1e-06  ;;  %v2374_v29 = vmax.f32 %v575_v42, 1e-06  ;;  %v472_v42 = vpop.f32.mrf.mxu0 }
  0xfe   : > { %v562_v63 = vmax.f32 %v468_v36, 0.0  ;;  %v578_v24 = vmax.f32 %v532_v50, 0.0  ;;  %v460_v22 = vadd.f32 %v2174_v20, %v459_v39  ;;  %v524_v9 = vadd.f32 %v2174_v20, %v523_v40  ;;  %v1137_v23 = vpop.f32.mrf.mxu1 }
  0xff   : > { %2900 = vst [vmem:[#allocation9_spill] sm:$0xff] %v2374_v29  ;;  %v2379_v61 = vmul.f32 %v629_v51, %v2356_v17  ;;  %v2382_v62 = vmul.f32 %v645_v52, %v2358_v18  ;;  %v627_v11 = vmul.f32 %v2372_v28, %v2372_v28  ;;  %v643_v41 = vmul.f32 %v2374_v29, %v2374_v29  ;;  %v1121_v25 = vpop.f32.mrf.mxu0 }
 0x100   : > { %v2388_v36 = vmax.f32 %v562_v63, 1e-06  ;;  %v2390_v50 = vmax.f32 %v578_v24, 1e-06  ;;  %v560_v39 = vmax.f32 %v460_v22, 0.0  ;;  %v576_v40 = vmax.f32 %v524_v9, 0.0 }
 0x101   : > { %v2399_v10 = vmul.f32 %v627_v11, %v2372_v28  ;;  %v2402_v37 = vmul.f32 %v643_v41, %v2374_v29  ;;  %v481_v41 = vadd.f32 %v1120_v32, %v2174_v20  ;;  %v545_v0 = vadd.f32 %v1136_v33, %v2174_v20  ;;  %v475_v18 = vpop.f32.mrf.mxu0 }
 0x102   : > { %2901 = vst [vmem:[#allocation10_spill] sm:$0xff] %v2390_v50  ;;  %v630_v63 = vmul.f32 %v2388_v36, %v2388_v36  ;;  %v646_v9 = vmul.f32 %v2390_v50, %v2390_v50  ;;  %v2408_v24 = vmax.f32 %v560_v39, 1e-06  ;;  %v2410_v22 = vmax.f32 %v576_v40, 1e-06 }
 0x103   : > { %v565_v12 = vmax.f32 %v481_v41, 0.0  ;;  %v581_v60 = vmax.f32 %v545_v0, 0.0  ;;  %v473_v11 = vadd.f32 %v2174_v20, %v472_v42  ;;  %v537_v32 = vadd.f32 %v2174_v20, %v536_v59  ;;  %v539_v59 = vpop.f32.mrf.mxu1 }
 0x104   : > { %2902 = vst [vmem:[#allocation11_spill] sm:$0xff] %v2410_v22  ;;  %v2421_v49 = vmul.f32 %v630_v63, %v2388_v36  ;;  %v678_v39 = vmul.f32 %v646_v9, %v2390_v50  ;;  %v628_v40 = vmul.f32 %v2408_v24, %v2408_v24  ;;  %v644_v51 = vmul.f32 %v2410_v22, %v2410_v22 }
 0x105   : > { %v2439_v50 = vmax.f32 %v565_v12, 1e-06  ;;  %v2441_v41 = vmax.f32 %v581_v60, 1e-06  ;;  %v563_v0 = vmax.f32 %v473_v11, 0.0  ;;  %v579_v42 = vmax.f32 %v537_v32, 0.0 }
 0x106   : > { %v1257_v63 = vsel %vm2186_vm2, %v678_v39, 0   ;;  %v2436_v9 = vmul.f32 %v628_v40, %v2408_v24  ;;  %v676_v52 = vmul.f32 %v644_v51, %v2410_v22  ;;  %v484_v40 = vadd.f32 %v1121_v25, %v2174_v20 }
 0x107   : > { %2903 = vst [vmem:[#allocation12_spill] sm:$0xff] %v2441_v41  ;;  %v548_v29 = vadd.f32 %v1137_v23, %v2174_v20  ;;  %v633_v12 = vmul.f32 %v2439_v50, %v2439_v50  ;;  %v649_v60 = vmul.f32 %v2441_v41, %v2441_v41  ;;  %v2454_v51 = vmax.f32 %v563_v0, 1e-06 }
 0x108   : > { %v1185_v33 = vsel %vm2186_vm2, %v2436_v9, 0   ;;  %v1249_v39 = vsel %vm2186_vm2, %v676_v52, 0   ;;  %v2456_v11 = vmax.f32 %v579_v42, 1e-06  ;;  %v566_v32 = vmax.f32 %v484_v40, 0.0 }
 0x109   : > { %v582_v22 = vmax.f32 %v548_v29, 0.0  ;;  %v476_v9 = vadd.f32 %v2174_v20, %v475_v18  ;;  %v540_v52 = vadd.f32 %v2174_v20, %v539_v59  ;;  %v665_v25 = vmul.f32 %v633_v12, %v2439_v50 }
 0x10a   : > { %2904 = vst [vmem:[#allocation13_spill] sm:$0xff] %v2456_v11  ;;  %v681_v23 = vmul.f32 %v649_v60, %v2441_v41  ;;  %v631_v4 = vmul.f32 %v2454_v51, %v2454_v51  ;;  %v647_v31 = vmul.f32 %v2456_v11, %v2456_v11  ;;  %v2466_v0 = vmax.f32 %v566_v32, 1e-06 }
 0x10b   : > { %v2468_v42 = vmax.f32 %v582_v22, 1e-06  ;;  %v564_v40 = vmax.f32 %v476_v9, 0.0  ;;  %v580_v29 = vmax.f32 %v540_v52, 0.0  ;;  %v1205_v18 = vsel %vm2186_vm2, %v665_v25, 0  }
 0x10c   : > { %v1269_v20 = vsel %vm2186_vm2, %v681_v23, 0   ;;  %v663_v59 = vmul.f32 %v631_v4, %v2454_v51  ;;  %v679_v12 = vmul.f32 %v647_v31, %v2456_v11  ;;  %v634_v60 = vmul.f32 %v2466_v0, %v2466_v0 }
 0x10d   : > { %v650_v22 = vmul.f32 %v2468_v42, %v2468_v42  ;;  %v596_v32 = vmax.f32 %v564_v40, 1e-06  ;;  %v2480_v9 = vmax.f32 %v580_v29, 1e-06 }
 0x10e   : > { %v1197_v52 = vsel %vm2186_vm2, %v663_v59, 0   ;;  %v1261_v25 = vsel %vm2186_vm2, %v679_v12, 0   ;;  %v666_v4 = vmul.f32 %v634_v60, %v2466_v0 }
 0x10f   : > { %v682_v31 = vmul.f32 %v650_v22, %v2468_v42  ;;  %v632_v23 = vmul.f32 %v596_v32, %v596_v32  ;;  %v648_v41 = vmul.f32 %v2480_v9, %v2480_v9  ;;  %v2906_v22 = vsel %vm2186_vm2, %v2402_v37, 0  }
 0x110   : > { %v1209_v11 = vsel %vm2186_vm2, %v666_v4, 0   ;;  %v2907_v4 = vsel %vm2186_vm2, %v2336_v44, 0   ;;  %v2910_v37 = vsel %vm2186_vm2, %v2314_v16, 0   ;;  %v2911_v44 = vsel %vm2186_vm2, %v2248_v14, 0  }
 0x111   : > { %v1273_v40 = vsel %vm2186_vm2, %v682_v31, 0   ;;  %v664_v29 = vmul.f32 %v632_v23, %v596_v32  ;;  %v680_v59 = vmul.f32 %v648_v41, %v2480_v9  ;;  %v2905_v41 = vsel %vm2186_vm2, %v2382_v62, 0  }
 0x112   : > { %v2908_v62 = vsel %vm2186_vm2, %v2294_v56, 0   ;;  %v2909_v31 = vsel %vm2186_vm2, %v2354_v8, 0   ;;  %v2912_v56 = vsel %vm2186_vm2, %v2206_v54, 0   ;;  %v2913_v8 = vsel %vm2186_vm2, %v2266_v27, 0   ;;  %717 = sbr.rel (%p615_p11) target bundleno = 356 (0x164), region = 44 }
 0x113   : > { %v1201_v12 = vsel %vm2186_vm2, %v664_v29, 0   ;;  %v1265_v60 = vsel %vm2186_vm2, %v680_v59, 0   ;;  %v2914_v16 = vsel %vm2186_vm2, %v2226_v2, 0   ;;  %v2915_v54 = vsel %vm2186_vm2, %v2421_v49, 0  }
 0x114   : > { %v2916_v2 = vsel %vm2186_vm2, %v2379_v61, 0   ;;  %v2917_v14 = vsel %vm2186_vm2, %v2399_v10, 0   ;;  %v2918_v27 = vsel %vm2186_vm2, %v2333_v43, 0   ;;  %v2919_v49 = vsel %vm2186_vm2, %v2291_v55, 0  }
 0x115   : > { %v2920_v61 = vsel %vm2186_vm2, %v2351_v7, 0   ;;  %v2921_v10 = vsel %vm2186_vm2, %v2311_v15, 0   ;;  %v2922_v43 = vsel %vm2186_vm2, %v2245_v13, 0   ;;  %v2923_v55 = vsel %vm2186_vm2, %v2203_v53, 0  }
 0x116   : > { %v2924_v7 = vsel %vm2186_vm2, %v2263_v26, 0   ;;  %v2925_v15 = vsel %vm2186_vm2, %v2223_v1, 0  }
 0x117   : > { %1588 = vlog2.f32 %v2196_v45  ;;  %v2669_v1 = vstv %s2168_s14  ;;  %v2928_v52 = vld [vmem:[#allocation9_spill] sm:$0xff]  ;;  %v2929_v40 = vld [vmem:[#allocation11_spill] sm:$0xff]  ;;  %v2930_v41 = vld [vmem:[#allocation8_spill] sm:$0xff] }
 0x118   : > { %1590 = vlog2.f32 %v2232_v5  ;;  %v2931_v37 = vld [vmem:[#allocation10_spill] sm:$0xff]  ;;  %v2932_v16 = vld [vmem:[#allocation13_spill] sm:$0xff]  ;;  %v2933_v7 = vld [vmem:[#allocation12_spill] sm:$0xff] }
 0x119   : > { %1592 = vlog2.f32 %v2182_v34 }
 0x11a   : > { %1594 = vlog2.f32 %v2212_v57 }
 0x11b   : > { %1596 = vlog2.f32 %v2284_v47 }
 0x11c   : > { %1598 = vlog2.f32 %v2320_v19 }
 0x11d   : > { %1600 = vlog2.f32 %v2268_v30 }
 0x11e   : > { %1602 = vlog2.f32 %v2300_v3 }
 0x11f   : > { %1604 = vlog2.f32 %v2372_v28 }
 0x120   : > { %1606 = vlog2.f32 %v2408_v24 }
 0x121   : > { %1608 = vlog2.f32 %v2356_v17 }
 0x122   : > { %1610 = vlog2.f32 %v2388_v36 }
 0x123   : > { %1612 = vlog2.f32 %v2454_v51 }
 0x124   : > { %v1589_v34 = vpop.eup %1588  ;;  %1614 = vlog2.f32 %v596_v32 }
 0x125   : > { %v1591_v38 = vpop.eup %1590  ;;  %v719_v45 = vmul.f32 0.6931472, %v1589_v34  ;;  %1616 = vlog2.f32 %v2439_v50 }
 0x126   : > { %v1593_v53 = vpop.eup %1592  ;;  %v721_v57 = vmul.f32 0.6931472, %v1591_v38  ;;  %1618 = vlog2.f32 %v2466_v0  ;;  %v2927_v0 = vld [vmem:[#allocation7_spill] sm:$0xff] }
 0x127   : > { %v1595_v5 = vpop.eup %1594  ;;  %1620 = vlog2.f32 %v2198_v46  ;;  %v723_v26 = vmul.f32 0.6931472, %v1593_v53  ;;  %v783_v3 = vmul.f32 %v2669_v1, %v719_v45 }
 0x128   : > { %v1597_v13 = vpop.eup %1596  ;;  %1622 = vlog2.f32 %v2234_v6  ;;  %v725_v47 = vmul.f32 0.6931472, %v1595_v5  ;;  %v784_v17 = vmul.f32 %v2669_v1, %v721_v57 }
 0x129   : > { %v1599_v30 = vpop.eup %1598  ;;  %1624 = vlog2.f32 %v2184_v35  ;;  %v727_v36 = vmul.f32 0.6931472, %v1597_v13  ;;  %v785_v6 = vmul.f32 %v2669_v1, %v723_v26  ;;  %v2926_v35 = vld [vmem:[#allocation6_spill] sm:$0xff]  ;;  %v815_v39 = vmul.f32 1.442695, %v783_v3 }
 0x12a   : > { %v1601_v19 = vpop.eup %1600  ;;  %1626 = vlog2.f32 %v2214_v58  ;;  %v729_v50 = vmul.f32 0.6931472, %v1599_v30  ;;  %v786_v63 = vmul.f32 %v2669_v1, %v725_v47  ;;  %v817_v18 = vmul.f32 1.442695, %v784_v17 }
 0x12b   : > { %v1603_v28 = vpop.eup %1602  ;;  %1628 = vlog2.f32 %v2286_v48  ;;  %v731_v33 = vmul.f32 0.6931472, %v1601_v19  ;;  %v819_v59 = vmul.f32 1.442695, %v785_v6 }
 0x12c   : > { %v1605_v46 = vpop.eup %1604  ;;  %1630 = vlog2.f32 %v2322_v21  ;;  %v733_v51 = vmul.f32 0.6931472, %v1603_v28  ;;  %v787_v21 = vmul.f32 %v2669_v1, %v727_v36  ;;  %v788_v29 = vmul.f32 %v2669_v1, %v729_v50 }
 0x12d   : > { %v1607_v24 = vpop.eup %1606  ;;  %1632 = vlog2.f32 %v2926_v35  ;;  %v735_v11 = vmul.f32 0.6931472, %v1605_v46  ;;  %v789_v22 = vmul.f32 %v2669_v1, %v731_v33  ;;  %v821_v4 = vmul.f32 1.442695, %v786_v63 }
 0x12e   : > { %v1609_v58 = vpop.eup %1608  ;;  %1634 = vlog2.f32 %v2927_v0  ;;  %v737_v20 = vmul.f32 0.6931472, %v1607_v24  ;;  %v790_v44 = vmul.f32 %v2669_v1, %v733_v51  ;;  %v823_v14 = vmul.f32 1.442695, %v787_v21 }
 0x12f   : > { %v1611_v48 = vpop.eup %1610  ;;  %v739_v32 = vmul.f32 0.6931472, %v1609_v58  ;;  %1636 = vlog2.f32 %v2928_v52  ;;  %v791_v56 = vmul.f32 %v2669_v1, %v735_v11  ;;  %v825_v10 = vmul.f32 1.442695, %v788_v29 }
 0x130   : > { %v1613_v25 = vpop.eup %1612  ;;  %v741_v23 = vmul.f32 0.6931472, %v1611_v48  ;;  %1638 = vlog2.f32 %v2929_v40  ;;  %v792_v54 = vmul.f32 %v2669_v1, %v737_v20  ;;  %v827_v34 = vmul.f32 1.442695, %v789_v22 }
 0x131   : > { %v1615_v12 = vpop.eup %1614  ;;  %v743_v60 = vmul.f32 0.6931472, %v1613_v25  ;;  %1640 = vlog2.f32 %v2930_v41  ;;  %v793_v2 = vmul.f32 %v2669_v1, %v739_v32  ;;  %v829_v53 = vmul.f32 1.442695, %v790_v44 }
 0x132   : > { %v1617_v62 = vpop.eup %1616  ;;  %v745_v31 = vmul.f32 0.6931472, %v1615_v12  ;;  %1642 = vlog2.f32 %v2931_v37  ;;  %v794_v61 = vmul.f32 %v2669_v1, %v741_v23  ;;  %v831_v57 = vmul.f32 1.442695, %v791_v56 }
 0x133   : > { %v1619_v8 = vpop.eup %1618  ;;  %1644 = vlog2.f32 %v2932_v16  ;;  %v747_v49 = vmul.f32 0.6931472, %v1617_v62  ;;  %v795_v15 = vmul.f32 %v2669_v1, %v743_v60  ;;  %v835_v26 = vmul.f32 1.442695, %v793_v2 }
 0x134   : > { %v1621_v27 = vpop.eup %1620  ;;  %1646 = vlog2.f32 %v2480_v9  ;;  %v749_v55 = vmul.f32 0.6931472, %v1619_v8  ;;  %v796_v45 = vmul.f32 %v2669_v1, %v745_v31  ;;  %v833_v9 = vmul.f32 1.442695, %v792_v54 }
 0x135   : > { %v1623_v43 = vpop.eup %1622  ;;  %1648 = vlog2.f32 %v2933_v7  ;;  %v751_v13 = vmul.f32 0.6931472, %v1621_v27  ;;  %v797_v3 = vmul.f32 %v2669_v1, %v747_v49  ;;  %v837_v19 = vmul.f32 1.442695, %v794_v61 }
 0x136   : > { %v1625_v38 = vpop.eup %1624  ;;  %1650 = vlog2.f32 %v2468_v42  ;;  %v753_v47 = vmul.f32 0.6931472, %v1623_v43  ;;  %v798_v36 = vmul.f32 %v2669_v1, %v749_v55  ;;  %v839_v42 = vmul.f32 1.442695, %v795_v15 }
 0x137   : > { %v1627_v5 = vpop.eup %1626  ;;  %1652 = vpow2.f32 %v815_v39  ;;  %v755_v28 = vmul.f32 0.6931472, %v1625_v38  ;;  %v841_v24 = vmul.f32 1.442695, %v796_v45  ;;  %v799_v39 = vmul.f32 %v2669_v1, %v751_v13 }
 0x138   : > { %v1629_v30 = vpop.eup %1628  ;;  %1654 = vpow2.f32 %v817_v18  ;;  %v757_v50 = vmul.f32 0.6931472, %v1627_v5  ;;  %v800_v11 = vmul.f32 %v2669_v1, %v753_v47  ;;  %v843_v0 = vmul.f32 1.442695, %v797_v3 }
 0x139   : > { %v1631_v17 = vpop.eup %1630  ;;  %1656 = vpow2.f32 %v819_v59  ;;  %v759_v6 = vmul.f32 0.6931472, %v1629_v30  ;;  %v801_v20 = vmul.f32 %v2669_v1, %v755_v28  ;;  %v845_v32 = vmul.f32 1.442695, %v798_v36 }
 0x13a   : > { %v1633_v46 = vpop.eup %1632  ;;  %1658 = vpow2.f32 %v821_v4  ;;  %v761_v35 = vmul.f32 0.6931472, %v1631_v17  ;;  %v802_v25 = vmul.f32 %v2669_v1, %v757_v50  ;;  %v847_v12 = vmul.f32 1.442695, %v799_v39 }
 0x13b   : > { %v1635_v33 = vpop.eup %1634  ;;  %v763_v63 = vmul.f32 0.6931472, %v1633_v46  ;;  %1660 = vpow2.f32 %v823_v14  ;;  %v803_v23 = vmul.f32 %v2669_v1, %v759_v6  ;;  %v849_v44 = vmul.f32 1.442695, %v800_v11 }
 0x13c   : > { %v1637_v58 = vpop.eup %1636  ;;  %v765_v51 = vmul.f32 0.6931472, %v1635_v33  ;;  %1662 = vpow2.f32 %v825_v10  ;;  %v804_v29 = vmul.f32 %v2669_v1, %v761_v35  ;;  %v851_v8 = vmul.f32 1.442695, %v801_v20 }
 0x13d   : > { %v1639_v18 = vpop.eup %1638  ;;  %v767_v48 = vmul.f32 0.6931472, %v1637_v58  ;;  %1664 = vpow2.f32 %v827_v34  ;;  %v805_v59 = vmul.f32 %v2669_v1, %v763_v63  ;;  %v853_v16 = vmul.f32 1.442695, %v802_v25 }
 0x13e   : > { %v1641_v52 = vpop.eup %1640  ;;  %v769_v21 = vmul.f32 0.6931472, %v1639_v18  ;;  %1666 = vpow2.f32 %v829_v53  ;;  %v806_v22 = vmul.f32 %v2669_v1, %v765_v51  ;;  %v855_v54 = vmul.f32 1.442695, %v803_v23 }
 0x13f   : > { %v1643_v40 = vpop.eup %1642  ;;  %1668 = vpow2.f32 %v831_v57  ;;  %v771_v41 = vmul.f32 0.6931472, %v1641_v52  ;;  %v807_v4 = vmul.f32 %v2669_v1, %v767_v48  ;;  %v857_v27 = vmul.f32 1.442695, %v804_v29 }
 0x140   : > { %v1645_v60 = vpop.eup %1644  ;;  %1670 = vpow2.f32 %v833_v9  ;;  %v773_v31 = vmul.f32 0.6931472, %v1643_v40  ;;  %v808_v37 = vmul.f32 %v2669_v1, %v769_v21  ;;  %v859_v49 = vmul.f32 1.442695, %v805_v59 }
 0x141   : > { %v1647_v62 = vpop.eup %1646  ;;  %1672 = vpow2.f32 %v835_v26  ;;  %v775_v14 = vmul.f32 0.6931472, %v1645_v60  ;;  %v809_v61 = vmul.f32 %v2669_v1, %v771_v41  ;;  %v861_v10 = vmul.f32 1.442695, %v806_v22 }
 0x142   : > { %v1649_v56 = vpop.eup %1648  ;;  %1674 = vpow2.f32 %v837_v19  ;;  %v863_v43 = vmul.f32 1.442695, %v807_v4  ;;  %v777_v55 = vmul.f32 0.6931472, %v1647_v62  ;;  %v810_v34 = vmul.f32 %v2669_v1, %v773_v31 }
 0x143   : > { %v1651_v2 = vpop.eup %1650  ;;  %1676 = vpow2.f32 %v839_v42  ;;  %v865_v38 = vmul.f32 1.442695, %v808_v37  ;;  %v779_v53 = vmul.f32 0.6931472, %v1649_v56  ;;  %v811_v5 = vmul.f32 %v2669_v1, %v775_v14 }
 0x144   : > { %v2713_v15 = vpop.eup %1652   ;;  %1678 = vpow2.f32 %v841_v24  ;;  %v867_v9 = vmul.f32 1.442695, %v809_v61  ;;  %v781_v30 = vmul.f32 0.6931472, %v1651_v2  ;;  %v812_v3 = vmul.f32 %v2669_v1, %v777_v55 }
 0x145   : > { %v2716_v7 = vpop.eup %1654   ;;  %1680 = vpow2.f32 %v843_v0  ;;  %v869_v19 = vmul.f32 1.442695, %v810_v34  ;;  %v813_v17 = vmul.f32 %v2669_v1, %v779_v53  ;;  %v871_v36 = vmul.f32 1.442695, %v811_v5 }
 0x146   : > { %v2719_v45 = vpop.eup %1656   ;;  %1682 = vpow2.f32 %v845_v32  ;;  %v814_v28 = vmul.f32 %v2669_v1, %v781_v30  ;;  %v873_v42 = vmul.f32 1.442695, %v812_v3 }
 0x147   : > { %v2721_v57 = vpop.eup %1658   ;;  %1684 = vpow2.f32 %v847_v12  ;;  %v875_v46 = vmul.f32 1.442695, %v813_v17  ;;  %v2938_v55 = vmov %v2719_v45 }
 0x148   : > { %v2724_v13 = vpop.eup %1660   ;;  %1686 = vpow2.f32 %v849_v44  ;;  %v877_v50 = vmul.f32 1.442695, %v814_v28 }
 0x149   : > { %v2726_v61 = vpop.eup %1662   ;;  %1688 = vpow2.f32 %v851_v8 }
 0x14a   : > { %v2728_v26 = vpop.eup %1664   ;;  %1690 = vpow2.f32 %v853_v16 }
 0x14b   : > { %v2730_v47 = vpop.eup %1666   ;;  %1692 = vpow2.f32 %v855_v54 }
 0x14c   : > { %v2733_v14 = vpop.eup %1668   ;;  %1694 = vpow2.f32 %v857_v27  ;;  %v2934_v27 = vmov %v2730_v47 }
 0x14d   : > { %v1671_v33 = vpop.eup %1670   ;;  %1696 = vpow2.f32 %v859_v49  ;;  %v2935_v49 = vmov %v2728_v26 }
 0x14e   : > { %v1673_v2 = vpop.eup %1672   ;;  %1698 = vpow2.f32 %v861_v10  ;;  %v2936_v10 = vmov %v2724_v13 }
 0x14f   : > { %v1675_v54 = vpop.eup %1674   ;;  %1700 = vpow2.f32 %v863_v43  ;;  %v2937_v43 = vmov %v2721_v57 }
 0x150   : > { %v1677_v52 = vpop.eup %1676   ;;  %1702 = vpow2.f32 %v865_v38 }
 0x151   : > { %v1679_v12 = vpop.eup %1678   ;;  %1704 = vpow2.f32 %v867_v9 }
 0x152   : > { %v1681_v18 = vpop.eup %1680   ;;  %1706 = vpow2.f32 %v869_v19 }
 0x153   : > { %v1683_v11 = vpop.eup %1682   ;;  %1708 = vpow2.f32 %v871_v36 }
 0x154   : > { %v1685_v16 = vpop.eup %1684   ;;  %1710 = vpow2.f32 %v873_v42 }
 0x155   : > { %v1687_v8 = vpop.eup %1686   ;;  %1712 = vpow2.f32 %v875_v46 }
 0x156   : > { %v1689_v56 = vpop.eup %1688   ;;  %1714 = vpow2.f32 %v877_v50 }
 0x157   : > { %v1691_v44 = vpop.eup %1690  }
 0x158   : > { %v1693_v37 = vpop.eup %1692  }
 0x159   : > { %v1695_v31 = vpop.eup %1694  }
 0x15a   : > { %v1697_v62 = vpop.eup %1696  }
 0x15b   : > { %v1699_v4 = vpop.eup %1698  }
 0x15c   : > { %v1701_v22 = vpop.eup %1700  }
 0x15d   : > { %v1703_v39 = vpop.eup %1702  }
 0x15e   : > { %v1705_v41 = vpop.eup %1704  }
 0x15f   : > { %v1707_v63 = vpop.eup %1706  }
 0x160   : > { %v1709_v25 = vpop.eup %1708  }
 0x161   : > { %v1711_v60 = vpop.eup %1710  }
 0x162   : > { %v1713_v20 = vpop.eup %1712  }
 0x163   : > { %v1715_v40 = vpop.eup %1714  }
 0x164 PF: > { %v911_v1 = vadd.f32 %v2036_v7, %v2040_v15  ;;  %s1077_s24 = sshll.u32 %s2092_s0, 4  ;;  %s980_s29 = sshll.u32 %s2501_s23, 4  ;;  %v2040_v15 = vphi %v2925_v15, %v2713_v15   ;;  %v2036_v7 = vphi %v2924_v7, %v2716_v7   ;;  %v2032_v55 = vphi %v2923_v55, %v2938_v55   ;;  %v2028_v43 = vphi %v2922_v43, %v2937_v43   ;;  %v2024_v10 = vphi %v2921_v10, %v2936_v10   ;;  %v2020_v61 = vphi %v2920_v61, %v2726_v61   ;;  %v2016_v49 = vphi %v2919_v49, %v2935_v49   ;;  %v2012_v27 = vphi %v2918_v27, %v2934_v27   ;;  %v2008_v14 = vphi %v2917_v14, %v2733_v14   ;;  %v2004_v33 = vphi %v1185_v33, %v1671_v33   ;;  %v2000_v2 = vphi %v2916_v2, %v1673_v2   ;;  %v1996_v54 = vphi %v2915_v54, %v1675_v54   ;;  %v1992_v52 = vphi %v1197_v52, %v1677_v52   ;;  %v1988_v12 = vphi %v1201_v12, %v1679_v12   ;;  %v1984_v18 = vphi %v1205_v18, %v1681_v18   ;;  %v1980_v11 = vphi %v1209_v11, %v1683_v11   ;;  %v1976_v16 = vphi %v2914_v16, %v1685_v16   ;;  %v1972_v8 = vphi %v2913_v8, %v1687_v8   ;;  %v1968_v56 = vphi %v2912_v56, %v1689_v56   ;;  %v1964_v44 = vphi %v2911_v44, %v1691_v44   ;;  %v1960_v37 = vphi %v2910_v37, %v1693_v37   ;;  %v1956_v31 = vphi %v2909_v31, %v1695_v31   ;;  %v1952_v62 = vphi %v2908_v62, %v1697_v62   ;;  %v1948_v4 = vphi %v2907_v4, %v1699_v4   ;;  %v1944_v22 = vphi %v2906_v22, %v1701_v22   ;;  %v1940_v39 = vphi %v1249_v39, %v1703_v39   ;;  %v1936_v41 = vphi %v2905_v41, %v1705_v41   ;;  %v1932_v63 = vphi %v1257_v63, %v1707_v63   ;;  %v1928_v25 = vphi %v1261_v25, %v1709_v25   ;;  %v1924_v60 = vphi %v1265_v60, %v1711_v60   ;;  %v1920_v20 = vphi %v1269_v20, %v1713_v20   ;;  %v1916_v40 = vphi %v1273_v40, %v1715_v40   ;;  %s981_s29 = int_to_ptr.vmem [resolvable:$true] %s980_s29 }
 0x165   : > { %s978_s6 = scalar_lea.hbm %s2884_s4, %s1077_s24  ;;  %s968_s7 = scalar_lea.sflag [#allocation4], %s189_s28 }
 0x166   : > { %v912_v6 = vadd.f32 %v2032_v55, %v911_v1  ;;  %s1724_s8 = scalar_lea.vmem %s981_s29, 16  ;;  %s2042_s9 = smov [#allocation3]  }
 0x167   : > { %p1725_p12 = scmp.ne.s32.totalorder %s981_s29, %s1724_s8  ;;  %s1728_s10 = sshll.u32 %s2042_s9, 4  ;;  %s1729_s10 = int_to_ptr.vmem [resolvable:$false] %s1728_s10 }
 0x168   : > { %v913_v24 = vadd.f32 %v2028_v43, %v912_v6  ;;  %s1730_s0 = scalar_lea.vmem %s1729_s10, 32  ;;  %p1731_p1 = scmp.lt.s32.totalorder %s981_s29, %s1729_s10 }
 0x169   : > { %p1726_p13 = pnand %p1725_p12, %p2109_p5  ;;  %p1732_p2 = scmp.lt.s32.totalorder %s1730_s0, %s1724_s8 }
 0x16a   : > { %v914_v35 = vadd.f32 %v2024_v10, %v913_v24 }
 0x16b   : > { %p1727_p0 = pneg %p1726_p13  ;;  %p1733_p3 = por %p1732_p2, %p1731_p1 }
 0x16c   : > { %v915_v58 = vadd.f32 %v2020_v61, %v914_v35 }
 0x16d   : > { %p1734_p4 = pnand %p1733_p3, %p1727_p0 }
 0x16e   : > { %v916_v51 = vadd.f32 %v2016_v49, %v915_v58 }
 0x170   : > { %v917_v0 = vadd.f32 %v2012_v27, %v916_v51 }
 0x172   : > { %v918_v48 = vadd.f32 %v2008_v14, %v917_v0 }
 0x174   : > { %v919_v32 = vadd.f32 %v2004_v33, %v918_v48 }
 0x176   : > { %v920_v21 = vadd.f32 %v2000_v2, %v919_v32 }
 0x178   : > { %v921_v23 = vadd.f32 %v1996_v54, %v920_v21 }
 0x17a   : > { %v922_v29 = vadd.f32 %v1992_v52, %v921_v23 }
 0x17c   : > { %v923_v59 = vadd.f32 %v1988_v12, %v922_v29 }
 0x17e   : > { %v924_v34 = vadd.f32 %v1984_v18, %v923_v59 }
 0x180   : > { %v925_v38 = vadd.f32 %v1980_v11, %v924_v34 }
 0x182   : > { %v926_v45 = vadd.f32 %v1976_v16, %v925_v38 }
 0x184   : > { %v927_v53 = vadd.f32 %v1972_v8, %v926_v45 }
 0x186   : > { %v928_v57 = vadd.f32 %v1968_v56, %v927_v53 }
 0x188   : > { %v929_v5 = vadd.f32 %v1964_v44, %v928_v57  ;;  %v951_v44 = vstv %s2168_s14 }
 0x189   : > { %1716 = vrcp.f32 %v951_v44 }
 0x18a   : > { %v930_v13 = vadd.f32 %v1960_v37, %v929_v5 }
 0x18c   : > { %v931_v7 = vadd.f32 %v1956_v31, %v930_v13 }
 0x18e   : > { %v932_v15 = vadd.f32 %v1952_v62, %v931_v7 }
 0x190   : > { %v933_v10 = vadd.f32 %v1948_v4, %v932_v15 }
 0x192   : > { %v934_v61 = vadd.f32 %v1944_v22, %v933_v10 }
 0x194   : > { %v935_v49 = vadd.f32 %v1940_v39, %v934_v61 }
 0x196   : > { %v936_v27 = vadd.f32 %v1936_v41, %v935_v49  ;;  %v1717_v62 = vpop.eup %1716 }
 0x198   : > { %v937_v14 = vadd.f32 %v1932_v63, %v936_v27 }
 0x19a   : > { %v938_v33 = vadd.f32 %v1928_v25, %v937_v14 }
 0x19c   : > { %v939_v2 = vadd.f32 %v1924_v60, %v938_v33 }
 0x19e   : > { %v940_v54 = vadd.f32 %v1920_v20, %v939_v2  ;;  %v956_v20 = vlaneseq }
 0x1a0   : > { %v941_v52 = vadd.f32 %v1916_v40, %v940_v54  ;;  %v957_v40 = vand.u32 127, %v956_v20 }
 0x1a2   : > { %v942_v12 = vrot.slane %v941_v52, 4  ;;  %vm958_vm3 = vcmp.lt.s32.totalorder %v957_v40, 32 }
 0x1a4   : > { %v943_v18 = vadd.f32 %v942_v12, %v941_v52 }
 0x1a6   : > { %v944_v11 = vrot.slane %v943_v18, 2 }
 0x1a8   : > { %v945_v16 = vadd.f32 %v944_v11, %v943_v18 }
 0x1aa   : > { %v946_v8 = vrot.slane %v945_v16, 1 }
 0x1ac   : > { %v947_v56 = vadd.f32 %v946_v8, %v945_v16 }
 0x1ae   : > { %v948_v37 = vmul.f32 0.00390625, %v947_v56 }
 0x1b0   : > { %1718 = vlog2.f32 %v948_v37 }
 0x1bd   : > { %v1719_v22 = vpop.eup %1718 }
 0x1be   : > { %v950_v39 = vmul.f32 0.6931472, %v1719_v22 }
 0x1c0   : > { %v953_v63 = vmul.f32 %v1717_v62, %v950_v39 }
 0x1c2   : > { %v954_v25 = vmul.f32 1.442695, %v953_v63 }
 0x1c4   : > { %1720 = vpow2.f32 %v954_v25 }
 0x1d1   : > { %v1721_v60 = vpop.eup %1720 }
 0x1d2   : > { %v959_v41 = vsel %vm958_vm3, %v1721_v60, 0.0 }
 0x1d3   : > { %v960_v4 = vmul.f32 %v959_v41, %v959_v41 }
 0x1d5   : > { %961 = vadd.xlane.f32.xlu0 %v960_v4 }
 0x25e   : > { %v962_v31 = vpop.xlane.xlu0 %961 }
 0x25f   : > { %v963_v43 = vmax.f32 %v962_v31, 1e-24 }
 0x261   : > { %1722 = vrsqrt.f32 %v963_v43 }
 0x26e   : > { %v1723_v55 = vpop.eup %1722 }
 0x26f   : > { %v965_v9 = vmul.f32 %v1723_v55, %v959_v41 }
 0x271   : > { %966 = vst [vmem:[%s2501_s23] sm:$0x1] %v965_v9 }
 0x272   : > { %1737 = shalt.err (!%p1734_p4)
}
 0x273   : > { %s1738_s11 = scalar_lea.hbm %s978_s6, 16  ;;  %s1742_s13 = scalar_lea.hbm %s2884_s4, 32 }
 0x274   : > { %p1739_p7 = scmp.ne.s32.totalorder %s978_s6, %s1738_s11  ;;  %p1743_p10 = scmp.lt.s32.totalorder %s978_s6, %s2884_s4 }
 0x275   : > { %p1744_p11 = scmp.lt.s32.totalorder %s1742_s13, %s1738_s11 }
 0x276   : > { %p1740_p8 = pnand %p1739_p7, %p2109_p5 }
 0x277   : > { %p1745_p12 = por %p1744_p11, %p1743_p10 }
 0x278   : > { %p1741_p9 = pneg %p1740_p8 }
 0x27a   : > { %p1746_p13 = pnand %p1745_p12, %p1741_p9 }
 0x27c   : > { %1749 = shalt.err (!%p1746_p13)
}
 0x27d   : > { %1274 = dma.vmem_to_hbm [thread:$0]  (%p2109_p5), %s981_s29, 16, %s978_s6, %s968_s7  }
 0x27e PF: > { %p1280_p0 = scmp.ge.s32.totalorder %s1912_s20, 2  ;;  %s992_s16 = sand.u32 1, %s1900_s17  }
 0x27f   : > { %s993_s21 = scalar_lea.sflag [#allocation4], %s992_s16 }
 0x280   : > { %p1277_p1 = pnand %p1280_p0, %p2113_p6 }
 0x282   : > { %p1278_p2 = pneg %p1277_p1 }
 0x284   : > { %1895 = dma.done.wait (%p1278_p2), %s993_s21, 16  }
 0x285   : > { %1897 = vsyncadd (%p1278_p2), %s993_s21, 4294967280  ;;  %p15_p3 = scmp.ge.s32.totalorder %s2096_s22, 4   ;;  %s2939_s17 = smov %s1904_s18 }
 0x286   : > { %s2940_s18 = smov %s1908_s19  ;;  %s2941_s19 = smov %s2107_s25 }
 0x287   : > { %s2942_s20 = smov %s2096_s22  ;;  %17 = sbr.rel (!%p15_p3) target bundleno = 5 (0x5), region = 79 }
 0x28c   :  { %997 = vsyncpa [#allocation4], 1 }
 0x28d   :  { %999 = vsyncpa [#allocation4 + $0x1], 1 }

</bundles_post_ra>
